<compile_context>
chip_gen: v7x
topology: tpu7x:2x2x1
jax: 0.10.0
libtpu: 0.0.40
codegen_flags: <defaults>
</compile_context>

<pallas_src>
import jax
import jax.numpy as jnp
from jax import lax
from jax.experimental import pallas as pl
from jax.experimental.pallas import tpu as pltpu

OUT_PAD = 8      # 3 output features padded to one sublane group
MAX_TB = 8192    # cap on the batch tile (lanes of the transposed output)
MAX_TK = 4096    # K extent of one tile before a reduction grid axis is added


def mlp_kernel(x_ref, w_ref, b_ref, o_ref, acc_ref):
    # x_ref  : (tb, tk)       batch tile of X
    # w_ref  : (OUT_PAD, tk)  zero-row-padded weight tile
    # b_ref  : (OUT_PAD, 1)   zero-padded bias column
    # o_ref  : (OUT_PAD, tb)  transposed, lane-dense output tile
    # acc_ref: (OUT_PAD, tb)  f32 accumulator (persistent across the K axis)
    k = pl.program_id(1)

    @pl.when(k == 0)
    def _init():
        acc_ref[...] = jnp.zeros_like(acc_ref)

    # (OUT_PAD, tk) . (tb, tk)^T -> (OUT_PAD, tb); MXU with f32 accumulation.
    acc_ref[...] += lax.dot_general(
        w_ref[...], x_ref[...],
        dimension_numbers=(((1,), (1,)), ((), ())),
        preferred_element_type=jnp.float32,
    )

    @pl.when(k == pl.num_programs(1) - 1)
    def _finalize():
        o_ref[...] = (acc_ref[...] + b_ref[...]).astype(o_ref.dtype)


def _vmem_budgets():
    """Return (tile-data budget, vmem_limit_bytes) sized for this chip."""
    try:
        cap = pltpu.get_tpu_info().vmem_capacity_bytes
    except Exception:
        cap = 64 * 1024 * 1024            # assume v7x (smallest per-core VMEM)
    vmem_limit = min(cap // 2, 100 * 1024 * 1024)   # ~32 MiB v7x, 64 MiB v5e/v6e
    return int(vmem_limit * 0.75), vmem_limit


def _choose_tiles(B, K, itemsize, data_budget):
    # K (reduction) tile: bounded, and an exact divisor of K so no OOB garbage
    # ever enters the accumulation (batch-axis OOB is harmless, K-axis is not).
    if K <= MAX_TK:
        tk = K
    else:
        tk = next((c for c in range(MAX_TK, 127, -128) if K % c == 0), K)
    nk = K // tk

    # Batch tile: as big as the VMEM budget allows (amortizes the ~0.35 us
    # per-grid-step overhead), capped so large batches still give >= 2 tiles
    # for v7x's two TensorCores.
    per_row = 2 * tk * itemsize + 2 * OUT_PAD * itemsize + OUT_PAD * 4
    fixed = 2 * OUT_PAD * tk * itemsize + 2 * OUT_PAD * 128 * itemsize
    tb = max((data_budget - fixed) // per_row, 128)
    tb = min(tb, MAX_TB)
    if B <= 256:
        tb = B                                # single tile; block == full dim
    else:
        half = pl.cdiv(B, 2)
        tb = min(tb, pl.cdiv(half, 128) * 128)
        tb = max(128, (tb // 128) * 128)
    nb = pl.cdiv(B, tb)
    return tb, nb, tk, nk


def mlp_forward(x, w, b):
    """Equivalent of torch.nn.Linear(n_inputs, 3): returns x @ w.T + b."""
    B, K = x.shape
    out_features = w.shape[0]                 # 3
    dtype = x.dtype
    itemsize = jnp.dtype(dtype).itemsize

    # Wrapper-side (weight-sized, negligible) layout work: pad 3 rows -> 8.
    # Params are intentionally cast to the activation dtype (exact for f32).
    w_pad = jnp.zeros((OUT_PAD, K), dtype).at[:out_features, :].set(w.astype(dtype))
    b_pad = jnp.zeros((OUT_PAD, 1), dtype).at[:out_features, 0].set(b.astype(dtype))

    data_budget, vmem_limit = _vmem_budgets()
    tb, nb, tk, nk = _choose_tiles(B, K, itemsize, data_budget)
    Bp = nb * tb                              # padded output columns (alloc only)

    # Advisory cost: the real DMA traffic (x read, per-batch-tile weight
    # refetch, padded transposed output write), not the logical (B, 3) Linear.
    cost = pl.CostEstimate(
        flops=2 * Bp * K * OUT_PAD,
        transcendentals=0,
        bytes_accessed=(B * K + nb * OUT_PAD * K + OUT_PAD * Bp) * itemsize,
    )

    def _call(single_buffer):
        # Constant-index blocks (weight when K is untiled, bias always) only
        # ever need one buffer; freeing the second leaves more VMEM for tb.
        w_mode = {"pipeline_mode": pl.Buffered(1)} if (single_buffer and nk == 1) else {}
        b_mode = {"pipeline_mode": pl.Buffered(1)} if single_buffer else {}
        return pl.pallas_call(
            mlp_kernel,
            out_shape=jax.ShapeDtypeStruct((OUT_PAD, Bp), dtype),
            grid_spec=pltpu.PrefetchScalarGridSpec(
                num_scalar_prefetch=0,
                grid=(nb, nk),                # K (reduction) axis last
                in_specs=[
                    pl.BlockSpec((tb, tk), lambda i, k: (i, k)),            # x tile
                    pl.BlockSpec((OUT_PAD, tk), lambda i, k: (0, k), **w_mode),
                    pl.BlockSpec((OUT_PAD, 1), lambda i, k: (0, 0), **b_mode),
                ],
                out_specs=pl.BlockSpec((OUT_PAD, tb), lambda i, k: (0, i)),
                scratch_shapes=[pltpu.VMEM((OUT_PAD, tb), jnp.float32)],
            ),
            compiler_params=pltpu.CompilerParams(
                dimension_semantics=("parallel", "arbitrary"),
                vmem_limit_bytes=vmem_limit,
            ),
            cost_estimate=cost,
        )(x, w_pad, b_pad)

    try:
        out_t = _call(single_buffer=True)
    except Exception:
        # This jax version rejects pl.Buffered(1): fall back to the default
        # double-buffered resident blocks (slightly more VMEM, same results).
        out_t = _call(single_buffer=False)

    # (OUT_PAD, Bp) -> (B, 3): touches only 3 short rows, negligible traffic.
    return out_t[:out_features, :B].T


def init_linear_params(key, n_inputs, out_features=3, dtype=jnp.float32):
    # PyTorch nn.Linear default init: U(-1/sqrt(fan_in), 1/sqrt(fan_in)).
    kw, kb = jax.random.split(key)
    bound = 1.0 / float(n_inputs) ** 0.5
    w = jax.random.uniform(kw, (out_features, n_inputs), dtype, -bound, bound)
    b = jax.random.uniform(kb, (out_features,), dtype, -bound, bound)
    return w, b


if __name__ == "__main__":
    key = jax.random.PRNGKey(0)
    k_x, k_p = jax.random.split(key)

    # Small shapes consistent with the module: X is (batch, n_inputs).
    batch, n_inputs = 8, 32
    x = jax.random.normal(k_x, (batch, n_inputs), jnp.float32)
    w, b = init_linear_params(k_p, n_inputs)

    out = mlp_forward(x, w, b)
    jax.block_until_ready(out)
    assert out.shape == (batch, 3)
    assert jnp.allclose(out, x @ w.T + b, atol=1e-5, rtol=1e-5)

    # Also exercise the multi-batch-tile (ragged last tile, parallel axis) path.
    x2 = jax.random.normal(k_x, (300, 256), jnp.float32)
    w2, b2 = init_linear_params(k_p, 256)
    out2 = mlp_forward(x2, w2, b2)
    jax.block_until_ready(out2)
    assert out2.shape == (300, 3)
    assert jnp.allclose(out2, x2 @ w2.T + b2, atol=1e-4, rtol=1e-4)

    # ... and the K-tiled (reduction grid axis + f32 accumulator) path.
    x3 = jax.random.normal(k_x, (64, 2 * MAX_TK), jnp.float32)
    w3, b3 = init_linear_params(k_p, 2 * MAX_TK)
    out3 = mlp_forward(x3, w3, b3)
    jax.block_until_ready(out3)
    assert out3.shape == (64, 3)
    assert jnp.allclose(out3, x3 @ w3.T + b3, atol=5e-3, rtol=5e-3)

    print("KERNEL_OK")
</pallas_src>

<mosaic_0001>
module attributes {stable_mosaic.version = 11 : i64} {
  func.func @mlp_kernel(%arg0: i32, %arg1: i32, %arg2: memref<8x32xf32, #tpu.memory_space<vmem>>, %arg3: memref<8x32xf32, #tpu.memory_space<vmem>>, %arg4: memref<8x1xf32, #tpu.memory_space<vmem>>, %arg5: memref<8x8xf32, #tpu.memory_space<vmem>>, %arg6: memref<8x8xf32, #tpu.memory_space<vmem>>) attributes {dimension_semantics = [#tpu.dimension_semantics<parallel>, #tpu.dimension_semantics<arbitrary>], iteration_bounds = array<i64: 1, 1>, scalar_prefetch = 0 : i64, scratch_operands = 1 : i64, tpu.core_type = #tpu.core_type<tc>, window_params = [{transform_indices = @transform_0, window_bounds = array<i64: 8, 32>}, {pipeline_mode = #tpu.pipeline_mode<synchronous>, transform_indices = @transform_1, window_bounds = array<i64: 8, 32>}, {pipeline_mode = #tpu.pipeline_mode<synchronous>, transform_indices = @transform_2, window_bounds = array<i64: 8, 1>}, {transform_indices = @transform_3, window_bounds = array<i64: 8, 8>}]} {
    %c0_i32 = arith.constant 0 : i32
    %0 = arith.cmpi eq, %arg1, %c0_i32 : i32
    %1 = arith.extui %0 : i1 to i32
    %c0_i32_0 = arith.constant 0 : i32
    %2 = arith.cmpi ne, %1, %c0_i32_0 : i32
    scf.if %2 {
      %cst_10 = arith.constant 0.000000e+00 : f32
      %12 = vector.broadcast %cst_10 : f32 to vector<8x8xf32>
      %c0_11 = arith.constant 0 : index
      %c0_12 = arith.constant 0 : index
      %13 = vector.load %arg6[%c0_11, %c0_12] : memref<8x8xf32, #tpu.memory_space<vmem>>, vector<8x8xf32>
      tpu.vector_store %arg6[%c0_11, %c0_12], %12 {strides = array<i32>} : memref<8x8xf32, #tpu.memory_space<vmem>>, vector<8x8xf32>,
    } else {
    }
    %c0 = arith.constant 0 : index
    %c0_1 = arith.constant 0 : index
    %3 = vector.load %arg6[%c0, %c0_1] : memref<8x8xf32, #tpu.memory_space<vmem>>, vector<8x8xf32>
    %c0_2 = arith.constant 0 : index
    %c0_3 = arith.constant 0 : index
    %4 = vector.load %arg3[%c0_2, %c0_3] : memref<8x32xf32, #tpu.memory_space<vmem>>, vector<8x32xf32>
    %c0_4 = arith.constant 0 : index
    %c0_5 = arith.constant 0 : index
    %5 = vector.load %arg2[%c0_4, %c0_5] : memref<8x32xf32, #tpu.memory_space<vmem>>, vector<8x32xf32>
    %cst = arith.constant dense<0.000000e+00> : vector<8x8xf32>
    %6 = tpu.matmul %4, %5, %cst {dimension_numbers = #tpu.dot_dimension_numbers<[1], [1], [0], [0], [0, 0, 1, 0], [], []>} : vector<8x32xf32>, vector<8x32xf32>, vector<8x8xf32> -> vector<8x8xf32>
    %7 = arith.addf %3, %6 : vector<8x8xf32>
    %c0_6 = arith.constant 0 : index
    %c0_7 = arith.constant 0 : index
    %8 = vector.load %arg6[%c0_6, %c0_7] : memref<8x8xf32, #tpu.memory_space<vmem>>, vector<8x8xf32>
    tpu.vector_store %arg6[%c0_6, %c0_7], %7 {strides = array<i32>} : memref<8x8xf32, #tpu.memory_space<vmem>>, vector<8x8xf32>,
    %c0_i32_8 = arith.constant 0 : i32
    %9 = arith.cmpi eq, %arg1, %c0_i32_8 : i32
    %10 = arith.extui %9 : i1 to i32
    %c0_i32_9 = arith.constant 0 : i32
    %11 = arith.cmpi ne, %10, %c0_i32_9 : i32
    scf.if %11 {
      %c0_10 = arith.constant 0 : index
      %c0_11 = arith.constant 0 : index
      %12 = vector.load %arg6[%c0_10, %c0_11] : memref<8x8xf32, #tpu.memory_space<vmem>>, vector<8x8xf32>
      %c0_12 = arith.constant 0 : index
      %c0_13 = arith.constant 0 : index
      %13 = vector.load %arg4[%c0_12, %c0_13] : memref<8x1xf32, #tpu.memory_space<vmem>>, vector<8x1xf32>
      %14 = vector.broadcast %13 : vector<8x1xf32> to vector<8x8xf32>
      %15 = arith.addf %12, %14 : vector<8x8xf32>
      %c0_14 = arith.constant 0 : index
      %c0_15 = arith.constant 0 : index
      %16 = vector.load %arg5[%c0_14, %c0_15] : memref<8x8xf32, #tpu.memory_space<vmem>>, vector<8x8xf32>
      tpu.vector_store %arg5[%c0_14, %c0_15], %15 {strides = array<i32>} : memref<8x8xf32, #tpu.memory_space<vmem>>, vector<8x8xf32>,
    } else {
    }
    return
  }
  func.func @transform_0(%arg0: i32, %arg1: i32) -> (i32, i32) {
    %c0_i32 = arith.constant 0 : i32
    return %arg0, %arg1 : i32, i32
  }
  func.func @transform_1(%arg0: i32, %arg1: i32) -> (i32, i32) {
    %c0_i32 = arith.constant 0 : i32
    %c0_i32_0 = arith.constant 0 : i32
    return %c0_i32, %arg1 : i32, i32
  }
  func.func @transform_2(%arg0: i32, %arg1: i32) -> (i32, i32) {
    %c0_i32 = arith.constant 0 : i32
    %c0_i32_0 = arith.constant 0 : i32
    %c0_i32_1 = arith.constant 0 : i32
    return %c0_i32, %c0_i32_0 : i32, i32
  }
  func.func @transform_3(%arg0: i32, %arg1: i32) -> (i32, i32) {
    %c0_i32 = arith.constant 0 : i32
    %c0_i32_0 = arith.constant 0 : i32
    return %c0_i32, %arg0 : i32, i32
  }
}

module attributes {stable_mosaic.version = 11 : i64} {
  func.func @mlp_kernel(%arg0: i32, %arg1: i32, %arg2: memref<8x32xf32, #tpu.memory_space<vmem>>, %arg3: memref<8x32xf32, #tpu.memory_space<vmem>>, %arg4: memref<8x1xf32, #tpu.memory_space<vmem>>, %arg5: memref<8x8xf32, #tpu.memory_space<vmem>>, %arg6: memref<8x8xf32, #tpu.memory_space<vmem>>) attributes {dimension_semantics = [#tpu.dimension_semantics<parallel>, #tpu.dimension_semantics<arbitrary>], iteration_bounds = array<i64: 1, 1>, scalar_prefetch = 0 : i64, scratch_operands = 1 : i64, tpu.core_type = #tpu.core_type<tc>, window_params = [{transform_indices = @transform_0, window_bounds = array<i64: 8, 32>}, {transform_indices = @transform_1, window_bounds = array<i64: 8, 32>}, {pipeline_mode = #tpu.pipeline_mode<synchronous>, transform_indices = @transform_2, window_bounds = array<i64: 8, 1>}, {transform_indices = @transform_3, window_bounds = array<i64: 8, 8>}]} {
    %c0_i32 = arith.constant 0 : i32
    %0 = arith.cmpi eq, %arg1, %c0_i32 : i32
    %1 = arith.extui %0 : i1 to i32
    %c0_i32_0 = arith.constant 0 : i32
    %2 = arith.cmpi ne, %1, %c0_i32_0 : i32
    scf.if %2 {
      %cst_10 = arith.constant 0.000000e+00 : f32
      %12 = vector.broadcast %cst_10 : f32 to vector<8x8xf32>
      %c0_11 = arith.constant 0 : index
      %c0_12 = arith.constant 0 : index
      %13 = vector.load %arg6[%c0_11, %c0_12] : memref<8x8xf32, #tpu.memory_space<vmem>>, vector<8x8xf32>
      tpu.vector_store %arg6[%c0_11, %c0_12], %12 {strides = array<i32>} : memref<8x8xf32, #tpu.memory_space<vmem>>, vector<8x8xf32>,
    } else {
    }
    %c0 = arith.constant 0 : index
    %c0_1 = arith.constant 0 : index
    %3 = vector.load %arg6[%c0, %c0_1] : memref<8x8xf32, #tpu.memory_space<vmem>>, vector<8x8xf32>
    %c0_2 = arith.constant 0 : index
    %c0_3 = arith.constant 0 : index
    %4 = vector.load %arg3[%c0_2, %c0_3] : memref<8x32xf32, #tpu.memory_space<vmem>>, vector<8x32xf32>
    %c0_4 = arith.constant 0 : index
    %c0_5 = arith.constant 0 : index
    %5 = vector.load %arg2[%c0_4, %c0_5] : memref<8x32xf32, #tpu.memory_space<vmem>>, vector<8x32xf32>
    %cst = arith.constant dense<0.000000e+00> : vector<8x8xf32>
    %6 = tpu.matmul %4, %5, %cst {dimension_numbers = #tpu.dot_dimension_numbers<[1], [1], [0], [0], [0, 0, 1, 0], [], []>} : vector<8x32xf32>, vector<8x32xf32>, vector<8x8xf32> -> vector<8x8xf32>
    %7 = arith.addf %3, %6 : vector<8x8xf32>
    %c0_6 = arith.constant 0 : index
    %c0_7 = arith.constant 0 : index
    %8 = vector.load %arg6[%c0_6, %c0_7] : memref<8x8xf32, #tpu.memory_space<vmem>>, vector<8x8xf32>
    tpu.vector_store %arg6[%c0_6, %c0_7], %7 {strides = array<i32>} : memref<8x8xf32, #tpu.memory_space<vmem>>, vector<8x8xf32>,
    %c0_i32_8 = arith.constant 0 : i32
    %9 = arith.cmpi eq, %arg1, %c0_i32_8 : i32
    %10 = arith.extui %9 : i1 to i32
    %c0_i32_9 = arith.constant 0 : i32
    %11 = arith.cmpi ne, %10, %c0_i32_9 : i32
    scf.if %11 {
      %c0_10 = arith.constant 0 : index
      %c0_11 = arith.constant 0 : index
      %12 = vector.load %arg6[%c0_10, %c0_11] : memref<8x8xf32, #tpu.memory_space<vmem>>, vector<8x8xf32>
      %c0_12 = arith.constant 0 : index
      %c0_13 = arith.constant 0 : index
      %13 = vector.load %arg4[%c0_12, %c0_13] : memref<8x1xf32, #tpu.memory_space<vmem>>, vector<8x1xf32>
      %14 = vector.broadcast %13 : vector<8x1xf32> to vector<8x8xf32>
      %15 = arith.addf %12, %14 : vector<8x8xf32>
      %c0_14 = arith.constant 0 : index
      %c0_15 = arith.constant 0 : index
      %16 = vector.load %arg5[%c0_14, %c0_15] : memref<8x8xf32, #tpu.memory_space<vmem>>, vector<8x8xf32>
      tpu.vector_store %arg5[%c0_14, %c0_15], %15 {strides = array<i32>} : memref<8x8xf32, #tpu.memory_space<vmem>>, vector<8x8xf32>,
    } else {
    }
    return
  }
  func.func @transform_0(%arg0: i32, %arg1: i32) -> (i32, i32) {
    %c0_i32 = arith.constant 0 : i32
    return %arg0, %arg1 : i32, i32
  }
  func.func @transform_1(%arg0: i32, %arg1: i32) -> (i32, i32) {
    %c0_i32 = arith.constant 0 : i32
    %c0_i32_0 = arith.constant 0 : i32
    return %c0_i32, %arg1 : i32, i32
  }
  func.func @transform_2(%arg0: i32, %arg1: i32) -> (i32, i32) {
    %c0_i32 = arith.constant 0 : i32
    %c0_i32_0 = arith.constant 0 : i32
    %c0_i32_1 = arith.constant 0 : i32
    return %c0_i32, %c0_i32_0 : i32, i32
  }
  func.func @transform_3(%arg0: i32, %arg1: i32) -> (i32, i32) {
    %c0_i32 = arith.constant 0 : i32
    %c0_i32_0 = arith.constant 0 : i32
    return %c0_i32, %arg0 : i32, i32
  }
}

</mosaic_0001>

<bundles_post_ra>
// kernel: tpu_custom_call.1
= control target key start
LH: loop header
LB: loop body
LE: loop exit
PB: predicated region body
PF: predicated region fallthrough
CT: control target
= control target key end

     0   :  { %8 = vsyncpa [#allocation4], 0  ;;  %s264_s0 = inlined_call_operand.vmem [shape: f32[8,32], index: 0, kind: input, shape index: {}]   ;;  %s265_s1 = inlined_call_operand.hbm [shape: f32[8,32], index: 1, kind: input, shape index: {}]   ;;  %s266_s2 = inlined_call_operand.vmem [shape: f32[8,1], index: 2, kind: input, shape index: {}]   ;;  %s267_s3 = inlined_call_operand.hbm [shape: f32[8,8], index: 3, kind: output, shape index: {}]  }
   0x1   :  { %9 = vsyncpa [#allocation5], 0  ;;  %s206_s12 = smov [#allocation3]   ;;  %s158_s16 = scalar_lea.hbm %s265_s1, 128 }
   0x2   :  { %s18_s13 = sshll.u32 %s206_s12, 4  ;;  %p159_p0 = scmp.ne.s32.totalorder %s265_s1, %s158_s16  ;;  %s19_s13 = int_to_ptr.vmem [resolvable:$true] %s18_s13 }
   0x3   :  { %p162_p1 = scmp.lt.u32.totalorder %s158_s16, %s265_s1 }
   0x5   :  { %p164_p2 = pnand %p162_p1, %p159_p0 }
   0x7   :  { %167 = shalt.err (!%p164_p2)
}
   0x8   :  { %s168_s21 = scalar_lea.vmem %s19_s13, 128  ;;  %p173_p4 = scmp.lt.s32.totalorder %s19_s13, %s19_s13 }
   0x9   :  { %p169_p3 = scmp.ne.s32.totalorder %s19_s13, %s168_s21  ;;  %p174_p5 = scmp.lt.s32.totalorder %s168_s21, %s168_s21 }
   0xb   :  { %p175_p6 = por %p174_p5, %p173_p4 }
   0xd   :  { %p176_p7 = pnand %p175_p6, %p169_p3 }
   0xf   :  { %179 = shalt.err (!%p176_p7)
}
  0x10   :  { %21 = dma.hbm_to_vmem [thread:$0]  %s265_s1, 128, %s19_s13, [#allocation4]  }
  0x11   :  { %202 = dma.done.wait [#allocation4], 128  }
  0x12   :  { %203 = vsyncadd [#allocation4], 4294967168  ;;  %vm31_vm0 = vcmask 64512   ;;  %v207_v0 = vmov 0.0   ;;  %vm208_vm1 = vmmov 0   ;;  %v209_v1 = vmov 0  }
  0x13   :  { %32 = vst.msk [vmem:[#allocation2] sm:$0xff] %vm31_vm0, %v207_v0  ;;  %147 = vmatprep.subr.mxu0 %v207_v0  ;;  %149 = vmatprep.mubr.msk.f32.mxu0 %vm208_vm1, %v207_v0  ;;  %vm36_vm2 = vcmask 261120   ;;  %v35_v2 = vld [vmem:[%s264_s0] sm:$0xff]  ;;  %v34_v4 = vld [vmem:[#allocation3] sm:$0xff]  ;;  %s210_s1 = smov [#allocation6]  }
  0x14   :  { %157 = vset.pattern.permute.xlu0 %v209_v1  ;;  %v120_v3 = vld [vmem:[%s266_s2] sm:$0xff]  ;;  %148 = vmatpush3.xpose.msk.msra.mxu0 %vm36_vm2, %v35_v2  ;;  %s134_s28 = sshll.u32 %s210_s1, 4  ;;  %s135_s28 = int_to_ptr.vmem [resolvable:$true] %s134_s28 }
  0x15   :  { %123 = vperm.xlu0 %157, %v120_v3   ;;  %s180_s0 = scalar_lea.vmem %s135_s28, 128  ;;  %p185_p9 = scmp.lt.s32.totalorder %s135_s28, %s135_s28 }
  0x16   :  { %p181_p8 = scmp.ne.s32.totalorder %s135_s28, %s180_s0  ;;  %p186_p10 = scmp.lt.s32.totalorder %s180_s0, %s180_s0 }
  0x17   :  { %150 = vmatmul.mubr.msk.f32.vlgmr.msra.gmra.mrb[0].mxu0 %vm36_vm2, %v34_v4 }
  0x18   :  { %p187_p11 = por %p186_p10, %p185_p9 }
  0x1a   :  { %v33_v5 = vld [vmem:[#allocation2] sm:$0xff]  ;;  %p188_p12 = pnand %p187_p11, %p181_p8 }
  0x94   :  { %v124_v9 = vpop.permute.xlu0 %123 }
  0xea   :  { %v109_v6 = vpop.f32.mrb[0].mxu0 }
  0xeb   :  { %v113_v7 = vadd.f32 %v109_v6, %v33_v5  ;;  %v151_v8 = vpop.f32.mrb[1].mxu0 }
  0xed   :  { %115 = vst.msk [vmem:[#allocation2] sm:$0xff] %vm31_vm0, %v113_v7 }
  0xf4   :  { %v119_v10 = vld [vmem:[#allocation2] sm:$0xff] }
  0xf5   :  { %v126_v11 = vadd.f32 %v124_v9, %v119_v10 }
  0xf7   :  { %127 = vst.msk [vmem:[#allocation6] sm:$0xff] %vm31_vm0, %v126_v11 }
  0xf8   :  { %191 = shalt.err (!%p188_p12)
}
  0xf9   :  { %s192_s30 = scalar_lea.hbm %s267_s3, 128 }
  0xfa   :  { %p193_p13 = scmp.ne.s32.totalorder %s267_s3, %s192_s30  ;;  %p196_p0 = scmp.lt.u32.totalorder %s192_s30, %s267_s3 }
  0xfc   :  { %p198_p1 = pnand %p196_p0, %p193_p13 }
  0xfe   :  { %201 = shalt.err (!%p198_p1)
}
  0xff   :  { %137 = dma.vmem_to_hbm [thread:$0]  %s135_s28, 128, %s267_s3, [#allocation5]  }
 0x100   :  { %204 = dma.done.wait [#allocation5], 128  }
 0x101   :  { %205 = vsyncadd [#allocation5], 4294967168 }
 0x102   :  { %141 = vsyncpa [#allocation4], 1 }
 0x103   :  { %142 = vsyncpa [#allocation5], 1 }

// kernel: tpu_custom_call.1
= control target key start
LH: loop header
LB: loop body
LE: loop exit
PB: predicated region body
PF: predicated region fallthrough
CT: control target
= control target key end

     0   :  { %8 = vsyncpa [#allocation4], 0  ;;  %s264_s0 = inlined_call_operand.vmem [shape: f32[8,32], index: 0, kind: input, shape index: {}]   ;;  %s265_s1 = inlined_call_operand.hbm [shape: f32[8,32], index: 1, kind: input, shape index: {}]   ;;  %s266_s2 = inlined_call_operand.vmem [shape: f32[8,1], index: 2, kind: input, shape index: {}]   ;;  %s267_s3 = inlined_call_operand.hbm [shape: f32[8,8], index: 3, kind: output, shape index: {}]  }
   0x1   :  { %9 = vsyncpa [#allocation5], 0  ;;  %s206_s12 = smov [#allocation3]   ;;  %s158_s16 = scalar_lea.hbm %s265_s1, 128 }
   0x2   :  { %s18_s13 = sshll.u32 %s206_s12, 4  ;;  %p159_p0 = scmp.ne.s32.totalorder %s265_s1, %s158_s16  ;;  %s19_s13 = int_to_ptr.vmem [resolvable:$true] %s18_s13 }
   0x3   :  { %p162_p1 = scmp.lt.u32.totalorder %s158_s16, %s265_s1 }
   0x5   :  { %p164_p2 = pnand %p162_p1, %p159_p0 }
   0x7   :  { %167 = shalt.err (!%p164_p2)
}
   0x8   :  { %s168_s21 = scalar_lea.vmem %s19_s13, 128  ;;  %p173_p4 = scmp.lt.s32.totalorder %s19_s13, %s19_s13 }
   0x9   :  { %p169_p3 = scmp.ne.s32.totalorder %s19_s13, %s168_s21  ;;  %p174_p5 = scmp.lt.s32.totalorder %s168_s21, %s168_s21 }
   0xb   :  { %p175_p6 = por %p174_p5, %p173_p4 }
   0xd   :  { %p176_p7 = pnand %p175_p6, %p169_p3 }
   0xf   :  { %179 = shalt.err (!%p176_p7)
}
  0x10   :  { %21 = dma.hbm_to_vmem [thread:$0]  %s265_s1, 128, %s19_s13, [#allocation4]  }
  0x11   :  { %202 = dma.done.wait [#allocation4], 128  }
  0x12   :  { %203 = vsyncadd [#allocation4], 4294967168  ;;  %vm31_vm0 = vcmask 64512   ;;  %v207_v0 = vmov 0.0   ;;  %vm208_vm1 = vmmov 0   ;;  %v209_v1 = vmov 0  }
  0x13   :  { %32 = vst.msk [vmem:[#allocation2] sm:$0xff] %vm31_vm0, %v207_v0  ;;  %147 = vmatprep.subr.mxu0 %v207_v0  ;;  %149 = vmatprep.mubr.msk.f32.mxu0 %vm208_vm1, %v207_v0  ;;  %vm36_vm2 = vcmask 261120   ;;  %v35_v2 = vld [vmem:[%s264_s0] sm:$0xff]  ;;  %v34_v4 = vld [vmem:[#allocation3] sm:$0xff]  ;;  %s210_s1 = smov [#allocation6]  }
  0x14   :  { %157 = vset.pattern.permute.xlu0 %v209_v1  ;;  %v120_v3 = vld [vmem:[%s266_s2] sm:$0xff]  ;;  %148 = vmatpush3.xpose.msk.msra.mxu0 %vm36_vm2, %v35_v2  ;;  %s134_s28 = sshll.u32 %s210_s1, 4  ;;  %s135_s28 = int_to_ptr.vmem [resolvable:$true] %s134_s28 }
  0x15   :  { %123 = vperm.xlu0 %157, %v120_v3   ;;  %s180_s0 = scalar_lea.vmem %s135_s28, 128  ;;  %p185_p9 = scmp.lt.s32.totalorder %s135_s28, %s135_s28 }
  0x16   :  { %p181_p8 = scmp.ne.s32.totalorder %s135_s28, %s180_s0  ;;  %p186_p10 = scmp.lt.s32.totalorder %s180_s0, %s180_s0 }
  0x17   :  { %150 = vmatmul.mubr.msk.f32.vlgmr.msra.gmra.mrb[0].mxu0 %vm36_vm2, %v34_v4 }
  0x18   :  { %p187_p11 = por %p186_p10, %p185_p9 }
  0x1a   :  { %v33_v5 = vld [vmem:[#allocation2] sm:$0xff]  ;;  %p188_p12 = pnand %p187_p11, %p181_p8 }
  0x94   :  { %v124_v9 = vpop.permute.xlu0 %123 }
  0xea   :  { %v109_v6 = vpop.f32.mrb[0].mxu0 }
  0xeb   :  { %v113_v7 = vadd.f32 %v109_v6, %v33_v5  ;;  %v151_v8 = vpop.f32.mrb[1].mxu0 }
  0xed   :  { %115 = vst.msk [vmem:[#allocation2] sm:$0xff] %vm31_vm0, %v113_v7 }
  0xf4   :  { %v119_v10 = vld [vmem:[#allocation2] sm:$0xff] }
  0xf5   :  { %v126_v11 = vadd.f32 %v124_v9, %v119_v10 }
  0xf7   :  { %127 = vst.msk [vmem:[#allocation6] sm:$0xff] %vm31_vm0, %v126_v11 }
  0xf8   :  { %191 = shalt.err (!%p188_p12)
}
  0xf9   :  { %s192_s30 = scalar_lea.hbm %s267_s3, 128 }
  0xfa   :  { %p193_p13 = scmp.ne.s32.totalorder %s267_s3, %s192_s30  ;;  %p196_p0 = scmp.lt.u32.totalorder %s192_s30, %s267_s3 }
  0xfc   :  { %p198_p1 = pnand %p196_p0, %p193_p13 }
  0xfe   :  { %201 = shalt.err (!%p198_p1)
}
  0xff   :  { %137 = dma.vmem_to_hbm [thread:$0]  %s135_s28, 128, %s267_s3, [#allocation5]  }
 0x100   :  { %204 = dma.done.wait [#allocation5], 128  }
 0x101   :  { %205 = vsyncadd [#allocation5], 4294967168 }
 0x102   :  { %141 = vsyncpa [#allocation4], 1 }
 0x103   :  { %142 = vsyncpa [#allocation5], 1 }

</bundles_post_ra>
